<compile_context>
chip_gen: v5e
topology: v5e:2x2
jax: 0.10.0
libtpu: 0.0.40
codegen_flags: <defaults>
</compile_context>

<pallas_src>
import functools
import math

import jax
import jax.numpy as jnp
from jax.experimental import pallas as pl
from jax.experimental.pallas import tpu as pltpu


# ----------------------------- Pallas kernel -------------------------------
def _bayes_conv_kernel(p_ref, wm_ref, wv_ref, eps_ref, b_ref, o_ref):
    """One (image, M-tile) block; M = OH*OW sits on the 128-lane axis.

    p_ref   : (K, TM)  bf16 im2col patches of x
    wm_ref  : (O, K)   bf16 mean weights (resident)
    wv_ref  : (O, K)   bf16 exp(logvar) weights (resident)
    eps_ref : (O, TM)  f32  standard-normal noise
    b_ref   : (O, 1)   f32  bias (zeros when the module has bias=False)
    o_ref   : (O, TM)  f32  output tile
    """
    p = p_ref[...]
    # mean path:  conv2d(x, mean)          -> W_mean @ patches
    lrt_mean = jnp.dot(wm_ref[...], p, preferred_element_type=jnp.float32)
    # variance path: conv2d(x*x, exp(lv))  -> W_var @ patches^2
    # bf16 square == round_bf16(exact product) (same result as the previous
    # explicit f32 round-trip); fed directly into the dot.
    lrt_var = jnp.dot(wv_ref[...], p * p, preferred_element_type=jnp.float32)
    lrt_std = jnp.sqrt(1e-16 + lrt_var)
    o_ref[...] = (lrt_mean + b_ref[...] + eps_ref[...] * lrt_std).astype(o_ref.dtype)


# ------------------------------- helpers ------------------------------------
def _round_up(a, b):
    return (a + b - 1) // b * b


def _cdiv(a, b):
    return -(-a // b)


def _choose_tm(m_spatial, n_images):
    """Lane-axis tile over OH*OW (multiple of 128).

    As large as possible (cap 8192 lanes) to amortize the ~0.35 us per-grid-
    step overhead, then split just enough to keep >= 4 total grid steps
    (>= 2 per v7x TensorCore on the 'parallel' axes) when the problem allows,
    so per-core double-buffering still overlaps DMA with compute.
    """
    m128 = _round_up(m_spatial, 128)
    cap = 8192
    n_m = _cdiv(m128, cap)
    while n_images * n_m < 4 and _round_up(_cdiv(m128, n_m + 1), 128) >= 256:
        n_m += 1
    return _round_up(_cdiv(m128, n_m), 128)


def _im2col_nkm(x, kH, kW, stride, padding, dilation):
    """x: [N, C, H, W] -> patches [N, C*kH*kW, OH*OW] (K on sublanes, M on lanes).

    K order is c*(kH*kW) + i*kW + j, matching weight.reshape(O, -1).  With the
    3-D layout only a (free) reshape is needed — no transpose pass.
    """
    N, C, H, W = x.shape
    OH = (H + 2 * padding - dilation * (kH - 1) - 1) // stride + 1
    OW = (W + 2 * padding - dilation * (kW - 1) - 1) // stride + 1
    xp = jnp.pad(x, ((0, 0), (0, 0), (padding, padding), (padding, padding)))
    cols = []
    for i in range(kH):
        for j in range(kW):
            di, dj = i * dilation, j * dilation
            cols.append(
                xp[:, :, di:di + (OH - 1) * stride + 1:stride,
                       dj:dj + (OW - 1) * stride + 1:stride])  # [N, C, OH, OW]
    patches = jnp.stack(cols, axis=2)                    # [N, C, kH*kW, OH, OW]
    patches = patches.reshape(N, C * kH * kW, OH * OW)   # contiguous merge
    return patches, OH, OW


# ------------------------------- wrapper ------------------------------------
@functools.partial(jax.jit, static_argnames=("stride", "padding", "dilation"))
def bayesian_conv2d_forward(x, mean_w, logvar_w, eps_nchw, bias=None,
                            *, stride=1, padding=0, dilation=1):
    """Forward pass of Bayesian_conv2D.

    x        : [N, C, H, W]   (NCHW, PyTorch convention)
    mean_w   : [O, C, kH, kW]
    logvar_w : [O, C, kH, kW]
    eps_nchw : [N, O, OH, OW] standard normal noise
    bias     : [O] or None
    returns  : [N, O, OH, OW]
    """
    N, C, H, W = x.shape
    O, _, kH, kW = mean_w.shape
    K = C * kH * kW

    # bf16 before im2col: the duplicated patch blob is written at 2 B/elt.
    patches, OH, OW = _im2col_nkm(x.astype(jnp.bfloat16), kH, kW,
                                  stride, padding, dilation)       # (N, K, Mp)
    Mp = OH * OW

    w_mean = mean_w.reshape(O, K).astype(jnp.bfloat16)             # (O, K)
    w_var = jnp.exp(logvar_w).reshape(O, K).astype(jnp.bfloat16)   # (O, K)
    eps_m = eps_nchw.reshape(N, O, Mp).astype(jnp.float32)         # (N, O, Mp)
    bias_col = (jnp.zeros((O, 1), jnp.float32) if bias is None
                else bias.astype(jnp.float32).reshape(O, 1))

    TM = _choose_tm(Mp, N)
    Mp_pad = _cdiv(Mp, TM) * TM
    if Mp_pad != Mp:
        patches = jnp.pad(patches, ((0, 0), (0, 0), (0, Mp_pad - Mp)))
        eps_m = jnp.pad(eps_m, ((0, 0), (0, 0), (0, Mp_pad - Mp)))

    # Explicit VMEM budget: double-buffered per-step tiles + resident weights
    # + headroom; capped so the same tiling is safe on v7x (64 MiB per TC).
    patch_tile = _round_up(K, 16) * TM * 2          # bf16
    eps_tile = _round_up(O, 8) * TM * 4             # f32
    out_tile = _round_up(O, 8) * TM * 4             # f32
    w_tile = _round_up(O, 16) * _round_up(K, 128) * 2
    bias_tile = _round_up(O, 8) * 128 * 4
    vmem_bytes = int(min(2 * (patch_tile + eps_tile + out_tile
                              + 2 * w_tile + bias_tile) + (8 << 20),
                         48 << 20))

    out_nom = pl.pallas_call(
        _bayes_conv_kernel,
        out_shape=jax.ShapeDtypeStruct((N, O, Mp_pad), jnp.float32),
        grid_spec=pltpu.PrefetchScalarGridSpec(
            num_scalar_prefetch=0,
            grid=(N, Mp_pad // TM),
            in_specs=[
                pl.BlockSpec((None, K, TM), lambda n, m: (n, 0, m)),   # patches
                pl.BlockSpec((O, K), lambda n, m: (0, 0)),             # mean W
                pl.BlockSpec((O, K), lambda n, m: (0, 0)),             # var W
                pl.BlockSpec((None, O, TM), lambda n, m: (n, 0, m)),   # eps
                pl.BlockSpec((O, 1), lambda n, m: (0, 0)),             # bias
            ],
            out_specs=pl.BlockSpec((None, O, TM), lambda n, m: (n, 0, m)),
        ),
        compiler_params=pltpu.CompilerParams(
            dimension_semantics=("parallel", "parallel"),
            vmem_limit_bytes=vmem_bytes),
    )(patches, w_mean, w_var, eps_m, bias_col)

    out = out_nom[:, :, :Mp].reshape(N, O, OH, OW)    # already NCHW, no transpose
    return out.astype(x.dtype)


# --------------------------- reference (pure JAX) ----------------------------
def _reference_forward(x, mean_w, var_w, eps_nchw, bias, stride, padding, dilation):
    dn = jax.lax.conv_dimension_numbers(x.shape, mean_w.shape, ("NCHW", "OIHW", "NCHW"))
    conv = lambda inp, ker: jax.lax.conv_general_dilated(
        inp, ker, window_strides=(stride, stride),
        padding=[(padding, padding), (padding, padding)],
        rhs_dilation=(dilation, dilation), dimension_numbers=dn)
    lrt_mean = conv(x, mean_w)
    if bias is not None:
        lrt_mean = lrt_mean + bias[None, :, None, None]
    lrt_std = jnp.sqrt(1e-16 + conv(x * x, var_w))
    return lrt_mean + eps_nchw * lrt_std


# --------------------------------- main --------------------------------------
def _run_case(key, *, N, C_in, H, W, C_out, ksize, stride, padding, dilation):
    k_x, k_mean, k_lv, k_eps = jax.random.split(key, 4)
    x = jax.random.normal(k_x, (N, C_in, H, W), dtype=jnp.float32)

    # deterministic parameter init mirroring reset_params():
    #   mean ~ U(-stdv, stdv),  logvar = log(U(0.5, 1.5)),  stdv = 1/sqrt(C_in*k*k)
    n_fan = C_in * ksize * ksize
    stdv = 1.0 / math.sqrt(n_fan)
    mean_w = jax.random.uniform(k_mean, (C_out, C_in, ksize, ksize),
                                minval=-stdv, maxval=stdv, dtype=jnp.float32)
    logvar_w = jnp.log(jax.random.uniform(k_lv, (C_out, C_in, ksize, ksize),
                                          minval=0.5, maxval=1.5, dtype=jnp.float32))
    # bias=False (module default) -> no bias term

    OH = (H + 2 * padding - dilation * (ksize - 1) - 1) // stride + 1
    OW = (W + 2 * padding - dilation * (ksize - 1) - 1) // stride + 1
    eps = jax.random.normal(k_eps, (N, C_out, OH, OW), dtype=jnp.float32)

    out = bayesian_conv2d_forward(x, mean_w, logvar_w, eps,
                                  stride=stride, padding=padding, dilation=dilation)
    out = jax.block_until_ready(out)
    assert out.shape == (N, C_out, OH, OW), out.shape

    # Tight check vs a reference that sees the same bf16-quantized inputs
    # (validates the kernel math; bf16 HBM storage is a deliberate choice).
    q = lambda a: a.astype(jnp.bfloat16).astype(jnp.float32)
    ref_q = _reference_forward(q(x), q(mean_w), q(jnp.exp(logvar_w)), eps,
                               None, stride, padding, dilation)
    err_q = float(jnp.max(jnp.abs(out - ref_q)))
    assert jnp.allclose(out, ref_q, atol=2e-2, rtol=2e-2), err_q

    # Loose sanity check vs the full-f32 reference (bounds bf16 storage error).
    ref_f = _reference_forward(x, mean_w, jnp.exp(logvar_w), eps,
                               None, stride, padding, dilation)
    err_f = float(jnp.max(jnp.abs(out - ref_f)))
    assert jnp.allclose(out, ref_f, atol=1.5e-1, rtol=5e-2), err_f


if __name__ == "__main__":
    key = jax.random.PRNGKey(0)
    k1, k2 = jax.random.split(key)
    # Small shapes consistent with the module: N=2, C_in=4, H=W=16, C_out=8, k=3.
    _run_case(k1, N=2, C_in=4, H=16, W=16, C_out=8, ksize=3,
              stride=1, padding=1, dilation=1)
    # Strided variant, no padding (exercises the general stride path).
    _run_case(k2, N=2, C_in=4, H=16, W=16, C_out=8, ksize=3,
              stride=2, padding=0, dilation=1)
    print("KERNEL_OK")
</pallas_src>

<mosaic_0001>
module attributes {stable_mosaic.version = 11 : i64} {
  func.func @_bayes_conv_kernel(%arg0: i32, %arg1: i32, %arg2: memref<1x36x256xbf16, #tpu.memory_space<vmem>>, %arg3: memref<8x36xbf16, #tpu.memory_space<vmem>>, %arg4: memref<8x36xbf16, #tpu.memory_space<vmem>>, %arg5: memref<1x8x256xf32, #tpu.memory_space<vmem>>, %arg6: memref<8x1xf32, #tpu.memory_space<vmem>>, %arg7: memref<1x8x256xf32, #tpu.memory_space<vmem>>) attributes {dimension_semantics = [#tpu.dimension_semantics<parallel>, #tpu.dimension_semantics<parallel>], iteration_bounds = array<i64: 2, 1>, scalar_prefetch = 0 : i64, scratch_operands = 0 : i64, tpu.core_type = #tpu.core_type<tc>, window_params = [{transform_indices = @transform_0, window_bounds = array<i64: 1, 36, 256>}, {pipeline_mode = #tpu.pipeline_mode<synchronous>, transform_indices = @transform_1, window_bounds = array<i64: 8, 36>}, {pipeline_mode = #tpu.pipeline_mode<synchronous>, transform_indices = @transform_2, window_bounds = array<i64: 8, 36>}, {transform_indices = @transform_3, window_bounds = array<i64: 1, 8, 256>}, {pipeline_mode = #tpu.pipeline_mode<synchronous>, transform_indices = @transform_4, window_bounds = array<i64: 8, 1>}, {transform_indices = @transform_5, window_bounds = array<i64: 1, 8, 256>}]} {
    %c0 = arith.constant 0 : index
    %c0_0 = arith.constant 0 : index
    %c0_1 = arith.constant 0 : index
    %0 = vector.load %arg2[%c0, %c0_0, %c0_1] : memref<1x36x256xbf16, #tpu.memory_space<vmem>>, vector<1x36x256xbf16>
    %1 = vector.shape_cast %0 : vector<1x36x256xbf16> to vector<36x256xbf16>
    %c0_2 = arith.constant 0 : index
    %c0_3 = arith.constant 0 : index
    %2 = vector.load %arg3[%c0_2, %c0_3] : memref<8x36xbf16, #tpu.memory_space<vmem>>, vector<8x36xbf16>
    %cst = arith.constant dense<0.000000e+00> : vector<8x256xf32>
    %3 = tpu.matmul %2, %1, %cst {dimension_numbers = #tpu.dot_dimension_numbers<[1], [0], [0], [1], [0, 0, 1, 1], [], []>} : vector<8x36xbf16>, vector<36x256xbf16>, vector<8x256xf32> -> vector<8x256xf32>
    %c0_4 = arith.constant 0 : index
    %c0_5 = arith.constant 0 : index
    %4 = vector.load %arg4[%c0_4, %c0_5] : memref<8x36xbf16, #tpu.memory_space<vmem>>, vector<8x36xbf16>
    %5 = arith.mulf %1, %1 : vector<36x256xbf16>
    %cst_6 = arith.constant dense<0.000000e+00> : vector<8x256xf32>
    %6 = tpu.matmul %4, %5, %cst_6 {dimension_numbers = #tpu.dot_dimension_numbers<[1], [0], [0], [1], [0, 0, 1, 1], [], []>} : vector<8x36xbf16>, vector<36x256xbf16>, vector<8x256xf32> -> vector<8x256xf32>
    %cst_7 = arith.constant 1.000000e-16 : f32
    %7 = vector.broadcast %cst_7 : f32 to vector<8x256xf32>
    %8 = arith.addf %7, %6 : vector<8x256xf32>
    %9 = math.sqrt %8 : vector<8x256xf32>
    %c0_8 = arith.constant 0 : index
    %c0_9 = arith.constant 0 : index
    %10 = vector.load %arg6[%c0_8, %c0_9] : memref<8x1xf32, #tpu.memory_space<vmem>>, vector<8x1xf32>
    %11 = vector.broadcast %10 : vector<8x1xf32> to vector<8x256xf32>
    %12 = arith.addf %3, %11 : vector<8x256xf32>
    %c0_10 = arith.constant 0 : index
    %c0_11 = arith.constant 0 : index
    %c0_12 = arith.constant 0 : index
    %13 = vector.load %arg5[%c0_10, %c0_11, %c0_12] : memref<1x8x256xf32, #tpu.memory_space<vmem>>, vector<1x8x256xf32>
    %14 = vector.shape_cast %13 : vector<1x8x256xf32> to vector<8x256xf32>
    %15 = arith.mulf %14, %9 : vector<8x256xf32>
    %16 = arith.addf %12, %15 : vector<8x256xf32>
    %c0_13 = arith.constant 0 : index
    %c0_14 = arith.constant 0 : index
    %c0_15 = arith.constant 0 : index
    %17 = vector.load %arg7[%c0_13, %c0_14, %c0_15] : memref<1x8x256xf32, #tpu.memory_space<vmem>>, vector<1x8x256xf32>
    %18 = vector.shape_cast %17 : vector<1x8x256xf32> to vector<8x256xf32>
    %19 = vector.shape_cast %16 : vector<8x256xf32> to vector<1x8x256xf32>
    tpu.vector_store %arg7[%c0_13, %c0_14, %c0_15], %19 {strides = array<i32>} : memref<1x8x256xf32, #tpu.memory_space<vmem>>, vector<1x8x256xf32>,
    return
  }
  func.func @transform_0(%arg0: i32, %arg1: i32) -> (i32, i32, i32) {
    %c0_i32 = arith.constant 0 : i32
    %c0_i32_0 = arith.constant 0 : i32
    return %arg0, %c0_i32, %arg1 : i32, i32, i32
  }
  func.func @transform_1(%arg0: i32, %arg1: i32) -> (i32, i32) {
    %c0_i32 = arith.constant 0 : i32
    %c0_i32_0 = arith.constant 0 : i32
    %c0_i32_1 = arith.constant 0 : i32
    return %c0_i32, %c0_i32_0 : i32, i32
  }
  func.func @transform_2(%arg0: i32, %arg1: i32) -> (i32, i32) {
    %c0_i32 = arith.constant 0 : i32
    %c0_i32_0 = arith.constant 0 : i32
    %c0_i32_1 = arith.constant 0 : i32
    return %c0_i32, %c0_i32_0 : i32, i32
  }
  func.func @transform_3(%arg0: i32, %arg1: i32) -> (i32, i32, i32) {
    %c0_i32 = arith.constant 0 : i32
    %c0_i32_0 = arith.constant 0 : i32
    return %arg0, %c0_i32, %arg1 : i32, i32, i32
  }
  func.func @transform_4(%arg0: i32, %arg1: i32) -> (i32, i32) {
    %c0_i32 = arith.constant 0 : i32
    %c0_i32_0 = arith.constant 0 : i32
    %c0_i32_1 = arith.constant 0 : i32
    return %c0_i32, %c0_i32_0 : i32, i32
  }
  func.func @transform_5(%arg0: i32, %arg1: i32) -> (i32, i32, i32) {
    %c0_i32 = arith.constant 0 : i32
    %c0_i32_0 = arith.constant 0 : i32
    return %arg0, %c0_i32, %arg1 : i32, i32, i32
  }
}

</mosaic_0001>

<bundles_post_ra>
// kernel: bayesian_conv2d_forward.1
= control target key start
LH: loop header
LB: loop body
LE: loop exit
PB: predicated region body
PF: predicated region fallthrough
CT: control target
= control target key end

     0   :  { %s698_s18 = smov 0   ;;  %s700_s19 = smov 0   ;;  %s766_s0 = inlined_call_operand.vmem [shape: bf16[2,36,256], index: 0, kind: input, shape index: {}]   ;;  %s767_s1 = inlined_call_operand.vmem [shape: bf16[8,36], index: 1, kind: input, shape index: {}]   ;;  %s768_s2 = inlined_call_operand.vmem [shape: bf16[8,36], index: 2, kind: input, shape index: {}]   ;;  %s769_s3 = inlined_call_operand.vmem [shape: f32[2,8,256], index: 3, kind: input, shape index: {}]   ;;  %s770_s4 = inlined_call_operand.vmem [shape: f32[8,1], index: 4, kind: input, shape index: {}]   ;;  %s771_s5 = inlined_call_operand.vmem [shape: f32[2,8,256], index: 5, kind: output, shape index: {}]  }
   0x1   :  { %s702_s20 = smov 0  }
   0x2 LB: > { %s27_s21 = sadd.s32 1, %s661_s19  ;;  %p578_p0 = scmp.ge.s32.totalorder %s665_s20, 1  ;;  %s665_s20 = sphi %s702_s20, %s15_s20   ;;  %s661_s19 = sphi %s700_s19, %s773_s19   ;;  %s657_s18 = sphi %s698_s18, %s772_s18  }
   0x3   : > { %p29_p1 = scmp.ge.s32.totalorder %s27_s21, 2  ;;  %p225_p2 = scmp.lt.s32.totalorder %s665_s20, 3 }
   0x5   : > { %s775_s21 = smov (%p29_p1, %s27_s21), 0  ;;  %p226_p3 = pnand %p578_p0, %p225_p2 }
   0x6   : > { %p271_p4 = scmp.lt.s32.totalorder (!%p226_p3), %s657_s18, 1 }
   0x7   : > { %229 = sbr.rel (%p226_p3) target bundleno = 190 (0xbe), region = 40 }
   0xc   : > { %v667_v0 = vmov 0   ;;  %v395_v1 = vld [vmem:[%s770_s4] sm:$0xff]  ;;  %s777_s18 = smov (!%p271_p4, %s657_s18), 1  ;;  %vm338_vm0 = vcmask 1041408   ;;  %vm334_vm1 = vcmask 293888  }
   0xd   : > { %638 = vset.pattern.permute.xlu0 %v667_v0  ;;  %s612_s24 = smul.u32 40, %s777_s18  ;;  %v306_v53 = vld [vmem:[%s767_s1] sm:$0xf]  ;;  %s606_s7 = sshll.u32 %s777_s18, 4 }
   0xe   : > { %398 = vperm.xlu0 %638, %v395_v1   ;;  %v307_v54 = vld [vmem:[%s768_s2] sm:$0xf]  ;;  %s288_s10 = scalar_lea.vmem %s769_s3, %s606_s7  ;;  %s298_s13 = scalar_lea.vmem %s771_s5, %s606_s7 }
   0xf   : > { %s725_s27 = scalar_lea.vmem %s766_s0, %s612_s24 }
  0x10   : > { %v305_v2 = vld [vmem:[%s725_s27 + $0x20] sm:$0x33]  ;;  %v303_v3 = vld [vmem:[%s725_s27 + $0x10] sm:$0xff]  ;;  %v304_v4 = vld [vmem:[%s725_s27 + $0x18] sm:$0xff] }
  0x11   : > { %v316_v5 = vunpack.c.l.bf16 %v305_v2  ;;  %v317_v6 = vunpack.c.h.bf16 %v305_v2  ;;  %v312_v7 = vunpack.c.l.bf16 %v303_v3  ;;  %v314_v8 = vunpack.c.l.bf16 %v304_v4  ;;  %v301_v13 = vld [vmem:[%s725_s27] sm:$0xff]  ;;  %v302_v18 = vld [vmem:[%s725_s27 + $0x8] sm:$0xff]  ;;  %v596_v23 = vld [vmem:[%s725_s27 + $0x10] sm:$0xf] }
  0x12   : > { %v313_v9 = vunpack.c.h.bf16 %v303_v3  ;;  %v315_v10 = vunpack.c.h.bf16 %v304_v4  ;;  %v414_v11 = vunpack.c.l.b16 %v305_v2  ;;  %v415_v12 = vunpack.c.h.b16 %v305_v2  ;;  %v611_v28 = vld [vmem:[%s725_s27 + $0x14] sm:$0xf0]  ;;  %v610_v29 = vld [vmem:[%s725_s27 + $0x14] sm:$0xf]  ;;  %v598_v30 = vld [vmem:[%s725_s27 + $0x18] sm:$0xf0] }
  0x13   : > { %v326_v14 = vmul.f32 %v316_v5, %v316_v5  ;;  %v327_v15 = vmul.f32 %v317_v6, %v317_v6  ;;  %v322_v16 = vmul.f32 %v312_v7, %v312_v7  ;;  %v324_v17 = vmul.f32 %v314_v8, %v314_v8  ;;  %v588_v39 = vld [vmem:[%s725_s27] sm:$0xf]  ;;  %v609_v44 = vld [vmem:[%s725_s27 + $0x4] sm:$0xf0]  ;;  %v608_v45 = vld [vmem:[%s725_s27 + $0x4] sm:$0xf] }
  0x14   : > { %v323_v19 = vmul.f32 %v313_v9, %v313_v9  ;;  %v325_v20 = vmul.f32 %v315_v10, %v315_v10  ;;  %v420_v21 = vpack.c.b16 %v414_v11, %v414_v11  ;;  %v421_v22 = vpack.c.b16 %v415_v12, %v415_v12  ;;  %v590_v46 = vld [vmem:[%s725_s27 + $0x8] sm:$0xf0] }
  0x15   : > { %v332_v24 = vpack.c.bf16 %v326_v14, %v326_v14  ;;  %v333_v25 = vpack.c.bf16 %v327_v15, %v327_v15  ;;  %v330_v26 = vpack.c.bf16 %v324_v17, %v322_v16  ;;  %v308_v27 = vunpack.c.l.bf16 %v301_v13  ;;  %v461_v17 = vld [vmem:[%s288_s10] sm:$0xff] }
  0x16   : > { %v331_v31 = vpack.c.bf16 %v325_v20, %v323_v19  ;;  %v430_v32 = vsel %vm338_vm0, %v420_v21, 0  ;;  %v433_v33 = vsel %vm338_vm0, %v421_v22, 0  ;;  %v310_v34 = vunpack.c.l.bf16 %v302_v18  ;;  %v462_v20 = vld [vmem:[%s288_s10 + $0x8] sm:$0xff] }
  0x17   : > { %v340_v35 = vsel %vm338_vm0, %v332_v24, 0  ;;  %v343_v36 = vsel %vm338_vm0, %v333_v25, 0  ;;  %440 = vmatpush.bf16.msra.mxu2 %v430_v32  ;;  %453 = vmatpush.bf16.msra.mxu3 %v433_v33  ;;  %v318_v37 = vmul.f32 %v308_v27, %v308_v27  ;;  %v309_v38 = vunpack.c.h.bf16 %v301_v13 }
  0x18   : > { %350 = vmatpush.bf16.msra.mxu0 %v340_v35  ;;  %363 = vmatpush.bf16.msra.mxu1 %v343_v36  ;;  %v320_v40 = vmul.f32 %v310_v34, %v310_v34  ;;  %v311_v41 = vunpack.c.h.bf16 %v302_v18  ;;  %v597_v42 = vor.u32 %v611_v28, %v596_v23  ;;  %v601_v43 = vor.u32 %v610_v29, %v598_v30 }
  0x19   : > { %v319_v47 = vmul.f32 %v309_v38, %v309_v38  ;;  %v589_v49 = vor.u32 %v609_v44, %v588_v39  ;;  %v593_v50 = vor.u32 %v608_v45, %v590_v46 }
  0x1a   : > { %v321_v48 = vmul.f32 %v311_v41, %v311_v41  ;;  %v328_v51 = vpack.c.bf16 %v320_v40, %v318_v37 }
  0x1b   : > { %441 = vmatpush.bf16.msra.mxu2 %v597_v42  ;;  %454 = vmatpush.bf16.msra.mxu3 %v601_v43 }
  0x1c   : > { %351 = vmatpush.bf16.msra.mxu0 %v330_v26  ;;  %364 = vmatpush.bf16.msra.mxu1 %v331_v31  ;;  %v329_v52 = vpack.c.bf16 %v321_v48, %v319_v47 }
  0x1f   : > { %442 = vmatpush.bf16.msra.mxu2 %v589_v49  ;;  %455 = vmatpush.bf16.msra.mxu3 %v593_v50 }
  0x20   : > { %352 = vmatpush.bf16.msra.mxu0 %v328_v51  ;;  %365 = vmatpush.bf16.msra.mxu1 %v329_v52 }
  0x22   : > { %602 = vmatmul.msk.bf16.vlgmr.msra.gmra.mxu2 %vm334_vm1, %v306_v53  ;;  %603 = vmatmul.msk.bf16.vlgmr.msra.gmra.mxu3 %vm334_vm1, %v306_v53 }
  0x23   : > { %584 = vmatmul.msk.bf16.vlgmr.msra.gmra.mxu0 %vm334_vm1, %v307_v54  ;;  %585 = vmatmul.msk.bf16.vlgmr.msra.gmra.mxu1 %vm334_vm1, %v307_v54 }
  0x80   : > { %v399_v14 = vpop.permute.xlu0 %398 }
  0xa0   : > { %v354_v55 = vpop.f32.mrf.mxu0  ;;  %v367_v56 = vpop.f32.mrf.mxu1 }
  0xa1   : > { %v355_v57 = vadd.f32 1e-16, %v354_v55  ;;  %v368_v58 = vadd.f32 1e-16, %v367_v56 }
  0xa3   : > { %639 = vrsqrt.f32 %v355_v57  ;;  %vm378_vm2 = vcmp.eq.f32.partialorder %v355_v57, inf  ;;  %v381_v15 = vand.u32 2147483648, %v355_v57  ;;  %vm380_vm3 = vcmp.eq.f32.partialorder %v355_v57, 0.0 }
  0xa4   : > { %641 = vrsqrt.f32 %v368_v58  ;;  %vm390_vm4 = vcmp.eq.f32.partialorder %v368_v58, inf  ;;  %v393_v19 = vand.u32 2147483648, %v368_v58  ;;  %vm392_vm5 = vcmp.eq.f32.partialorder %v368_v58, 0.0 }
  0xa5   : > { %v444_v59 = vpop.f32.mrf.mxu2  ;;  %v457_v60 = vpop.f32.mrf.mxu3 }
  0xa6   : > { %v445_v24 = vadd.f32 %v444_v59, %v399_v14  ;;  %v458_v26 = vadd.f32 %v457_v60, %v399_v14 }
  0xa8   : > { %v356_v61 = vpop.f32.mrf.mxu0  ;;  %v369_v62 = vpop.f32.mrf.mxu1 }
  0xa9   : > { %v640_v63 = vpop.eup %639 }
  0xaa   : > { %v642_v0 = vpop.eup %641  ;;  %v372_v1 = vmul.f32 %v640_v63, %v355_v57 }
  0xab   : > { %v384_v2 = vmul.f32 %v642_v0, %v368_v58 }
  0xac   : > { %v373_v3 = vmul.f32 %v640_v63, %v372_v1 }
  0xad   : > { %v385_v4 = vmul.f32 %v642_v0, %v384_v2  ;;  %v446_v5 = vpop.f32.mrf.mxu2  ;;  %v459_v6 = vpop.f32.mrf.mxu3 }
  0xae   : > { %v374_v7 = vmul.f32 0.5, %v373_v3 }
  0xaf   : > { %v386_v8 = vmul.f32 0.5, %v385_v4 }
  0xb0   : > { %v375_v9 = vsub.f32 1.5, %v374_v7 }
  0xb1   : > { %v387_v10 = vsub.f32 1.5, %v386_v8 }
  0xb2   : > { %v376_v11 = vmul.f32 %v640_v63, %v375_v9 }
  0xb3   : > { %v388_v12 = vmul.f32 %v642_v0, %v387_v10 }
  0xb4   : > { %v377_v13 = vmul.f32 %v376_v11, %v355_v57 }
  0xb5   : > { %v389_v16 = vmul.f32 %v388_v12, %v368_v58 }
  0xb6   : > { %v379_v18 = vsel %vm378_vm2, %v355_v57, %v377_v13 }
  0xb7   : > { %v382_v21 = vsel %vm380_vm3, %v381_v15, %v379_v18  ;;  %v391_v22 = vsel %vm390_vm4, %v368_v58, %v389_v16 }
  0xb8   : > { %v394_v23 = vsel %vm392_vm5, %v393_v19, %v391_v22  ;;  %v463_v25 = vmul.f32 %v461_v17, %v382_v21 }
  0xb9   : > { %v464_v27 = vmul.f32 %v462_v20, %v394_v23 }
  0xba   : > { %v465_v28 = vadd.f32 %v463_v25, %v445_v24 }
  0xbb   : > { %v466_v29 = vadd.f32 %v464_v27, %v458_v26 }
  0xbc   : > { %467 = vst [vmem:[%s298_s13] sm:$0xff] %v465_v28 }
  0xbd   : > { %468 = vst [vmem:[%s298_s13 + $0x8] sm:$0xff] %v466_v29 }
  0xbe PF: > { %s15_s20 = sadd.s32 1, %s665_s20   ;;  %s772_s18 = smov %s661_s19 }
  0xbf   : > { %p12_p5 = scmp.ge.s32.totalorder %s15_s20, 4   ;;  %s773_s19 = smov %s775_s21 }
  0xc1   :  { %14 = sbr.rel (!%p12_p5) target bundleno = 2 (0x2), region = 73 }

</bundles_post_ra>
